<compile_context>
chip_gen: v7x
topology: tpu7x:2x2x1
jax: 0.10.0
libtpu: 0.0.40
codegen_flags: <defaults>
</compile_context>

<pallas_src>
import math
import functools

import jax
import jax.numpy as jnp
from jax.experimental import pallas as pl
from jax.experimental.pallas import tpu as pltpu  # noqa: F401  (TPU backend namespace)


def _fused_gate_kernel(wu_ref, xh_ref, b_ref, o_ref, *, activation):
    # Single MXU matmul: [W | U] @ [x ; h]  -> one MXU push/drain sequence.
    z = jnp.dot(wu_ref[...], xh_ref[...], preferred_element_type=jnp.float32)
    z = z + b_ref[...].astype(jnp.float32)          # VPU add, f32
    if activation == "sigmoid":
        out = jax.nn.sigmoid(z)                     # EUP transcendental, f32
    elif activation == "tanh":
        out = jnp.tanh(z)
    else:
        raise ValueError(f"unsupported activation: {activation}")
    o_ref[...] = out.astype(o_ref.dtype)


def _full_spec(shape):
    # Single grid point; block == full array (satisfies the (8,128) rule via
    # the full-array exemption; (32,16) f32 lane-pads to (32,128) in VMEM).
    return pl.BlockSpec(shape, lambda: (0,) * len(shape))


def _call_fused(WU, xh, bias2d, out_rows, cols, dtype, activation):
    kernel = functools.partial(_fused_gate_kernel, activation=activation)
    return pl.pallas_call(
        kernel,
        grid=(),
        in_specs=[_full_spec(WU.shape), _full_spec(xh.shape), _full_spec(bias2d.shape)],
        out_specs=_full_spec((out_rows, cols)),
        out_shape=jax.ShapeDtypeStruct((out_rows, cols), dtype),
    )(WU, xh, bias2d)


def mat_gru_gate(W, U, bias, x, hidden, *, activation="sigmoid"):
    """Pallas implementation of mat_GRU_gate.forward (single gate)."""
    rows, cols = bias.shape
    assert W.shape == (rows, rows) and U.shape == (rows, rows)
    assert x.shape == (rows, cols) and hidden.shape == (rows, cols)

    # Wrapper-side fusion: [W | U] : (rows, 2*rows), [x ; h] : (2*rows, cols).
    # Cheap XLA concats; they fuse under jit and keep the kernel to one dot.
    WU = jnp.concatenate([W, U], axis=1)
    xh = jnp.concatenate([x, hidden], axis=0)
    return _call_fused(WU, xh, bias, rows, cols, x.dtype, activation)


def mat_gru_gates_stacked(Ws, Us, biases, x, hidden, *, activation="sigmoid"):
    """Evaluate G gates that share the same (x, hidden) in ONE pallas_call.

    Ws, Us : (G, rows, rows); biases : (G, rows, cols).  Returns (G, rows, cols).
    This is the fusion the EvolveGCN-H cell wants for its update + reset gates
    (both sigmoid, both consume the same x and previous hidden): one launch,
    one (G*rows, 2*rows) @ (2*rows, cols) matmul, x/h DMA'd once.
    """
    G, rows, _ = Ws.shape
    cols = biases.shape[-1]
    assert x.shape == (rows, cols) and hidden.shape == (rows, cols)

    WU = jnp.concatenate(
        [Ws.reshape(G * rows, rows), Us.reshape(G * rows, rows)], axis=1
    )                                                 # (G*rows, 2*rows)
    xh = jnp.concatenate([x, hidden], axis=0)         # (2*rows, cols)
    b = biases.reshape(G * rows, cols)                # (G*rows, cols)
    out = _call_fused(WU, xh, b, G * rows, cols, x.dtype, activation)
    return out.reshape(G, rows, cols)


def init_params(key, rows, cols, dtype=jnp.float32):
    """Deterministic init matching mat_GRU_gate.__init__ / reset_param."""
    kW, kU = jax.random.split(key)
    stdv = 1.0 / math.sqrt(rows)  # t.size(1) == rows for W and U
    W = jax.random.uniform(kW, (rows, rows), dtype, minval=-stdv, maxval=stdv)
    U = jax.random.uniform(kU, (rows, rows), dtype, minval=-stdv, maxval=stdv)
    bias = jnp.zeros((rows, cols), dtype)
    return W, U, bias


def reference(W, U, bias, x, hidden, activation="sigmoid"):
    z = W @ x + U @ hidden + bias
    return jax.nn.sigmoid(z) if activation == "sigmoid" else jnp.tanh(z)


if __name__ == "__main__":
    rows, cols = 32, 16  # small shapes consistent with the module (hidden=32)
    key = jax.random.PRNGKey(0)
    k_p0, k_p1, k_x, k_h = jax.random.split(key, 4)

    W0, U0, bias0 = init_params(k_p0, rows, cols)
    W1, U1, bias1 = init_params(k_p1, rows, cols)
    x = jax.random.normal(k_x, (rows, cols), jnp.float32)
    hidden = jax.random.normal(k_h, (rows, cols), jnp.float32)

    # --- single-gate path (matches mat_GRU_gate.forward exactly) ---
    gate_fn = jax.jit(functools.partial(mat_gru_gate, activation="sigmoid"))
    out = jax.block_until_ready(gate_fn(W0, U0, bias0, x, hidden))
    ref = reference(W0, U0, bias0, x, hidden, "sigmoid")
    assert out.shape == (rows, cols)
    assert jnp.allclose(out, ref, atol=1e-5, rtol=1e-5)

    # --- fused multi-gate path (update + reset gates in one launch) ---
    stacked_fn = jax.jit(functools.partial(mat_gru_gates_stacked, activation="sigmoid"))
    Ws = jnp.stack([W0, W1]); Us = jnp.stack([U0, U1]); Bs = jnp.stack([bias0, bias1])
    outs = jax.block_until_ready(stacked_fn(Ws, Us, Bs, x, hidden))
    ref0 = reference(W0, U0, bias0, x, hidden, "sigmoid")
    ref1 = reference(W1, U1, bias1, x, hidden, "sigmoid")
    assert outs.shape == (2, rows, cols)
    assert jnp.allclose(outs[0], ref0, atol=1e-5, rtol=1e-5)
    assert jnp.allclose(outs[1], ref1, atol=1e-5, rtol=1e-5)

    print("KERNEL_OK")
</pallas_src>

<mosaic_0001>
module attributes {stable_mosaic.version = 11 : i64} {
  func.func @_fused_gate_kernel(%arg0: memref<32x64xf32, #tpu.memory_space<vmem>>, %arg1: memref<64x16xf32, #tpu.memory_space<vmem>>, %arg2: memref<32x16xf32, #tpu.memory_space<vmem>>, %arg3: memref<32x16xf32, #tpu.memory_space<vmem>>) attributes {dimension_semantics = [], scalar_prefetch = 0 : i64, scratch_operands = 0 : i64, tpu.core_type = #tpu.core_type<tc>} {
    %c0 = arith.constant 0 : index
    %c0_0 = arith.constant 0 : index
    %0 = vector.load %arg0[%c0, %c0_0] : memref<32x64xf32, #tpu.memory_space<vmem>>, vector<32x64xf32>
    %c0_1 = arith.constant 0 : index
    %c0_2 = arith.constant 0 : index
    %1 = vector.load %arg1[%c0_1, %c0_2] : memref<64x16xf32, #tpu.memory_space<vmem>>, vector<64x16xf32>
    %cst = arith.constant dense<0.000000e+00> : vector<32x16xf32>
    %2 = tpu.matmul %0, %1, %cst {dimension_numbers = #tpu.dot_dimension_numbers<[1], [0], [0], [1], [0, 0, 1, 1], [], []>} : vector<32x64xf32>, vector<64x16xf32>, vector<32x16xf32> -> vector<32x16xf32>
    %c0_3 = arith.constant 0 : index
    %c0_4 = arith.constant 0 : index
    %3 = vector.load %arg2[%c0_3, %c0_4] : memref<32x16xf32, #tpu.memory_space<vmem>>, vector<32x16xf32>
    %4 = arith.addf %2, %3 : vector<32x16xf32>
    %5 = arith.negf %4 : vector<32x16xf32>
    %6 = math.exp %5 : vector<32x16xf32>
    %cst_5 = arith.constant 1.000000e+00 : f32
    %7 = vector.broadcast %cst_5 : f32 to vector<32x16xf32>
    %8 = arith.addf %7, %6 : vector<32x16xf32>
    %9 = arith.divf %7, %8 : vector<32x16xf32>
    %c0_6 = arith.constant 0 : index
    %c0_7 = arith.constant 0 : index
    %10 = vector.load %arg3[%c0_6, %c0_7] : memref<32x16xf32, #tpu.memory_space<vmem>>, vector<32x16xf32>
    tpu.vector_store %arg3[%c0_6, %c0_7], %9 {strides = array<i32>} : memref<32x16xf32, #tpu.memory_space<vmem>>, vector<32x16xf32>,
    return
  }
}

</mosaic_0001>

<bundles_post_ra>
// kernel: mat_gru_gate.1
= control target key start
LH: loop header
LB: loop body
LE: loop exit
PB: predicated region body
PF: predicated region fallthrough
CT: control target
= control target key end

     0   :  { %vm30_vm0 = vcmask 523264   ;;  %vm152_vm1 = vcmask 130048   ;;  %s327_s1 = inlined_call_operand.vmem [shape: f32[64,16], index: 1, kind: input, shape index: {}]   ;;  %s328_s0 = inlined_call_operand.vmem [shape: f32[32,64], index: 0, kind: input, shape index: {}]   ;;  %s329_s2 = inlined_call_operand.vmem [shape: f32[32,16], index: 2, kind: input, shape index: {}]   ;;  %s330_s3 = inlined_call_operand.vmem [shape: f32[32,16], index: 3, kind: output, shape index: {}]  }
   0x1   :  { %v18_v0 = vld [vmem:[%s327_s1] sm:$0xff]  ;;  %v19_v1 = vld [vmem:[%s327_s1 + $0x8] sm:$0xff]  ;;  %v20_v2 = vld [vmem:[%s327_s1 + $0x10] sm:$0xff] }
   0x2   :  { %v203_v3 = vpack.c.bf16 %v19_v1, %v18_v0  ;;  %v21_v4 = vld [vmem:[%s327_s1 + $0x18] sm:$0xff]  ;;  %v22_v6 = vld [vmem:[%s327_s1 + $0x20] sm:$0xff]  ;;  %v23_v7 = vld [vmem:[%s327_s1 + $0x28] sm:$0xff] }
   0x3   :  { %v207_v5 = vpack.c.bf16 %v21_v4, %v20_v2  ;;  %v14_v8 = vld [vmem:[%s328_s0] sm:$0xff]  ;;  %v16_v9 = vld [vmem:[%s328_s0 + $0x10] sm:$0xff]  ;;  %v211_v10 = vpack.c.bf16 %v23_v7, %v22_v6  ;;  %v25_v12 = vld [vmem:[%s327_s1 + $0x38] sm:$0xff] }
   0x4   :  { %204 = vmatprep.subr.bf16.mxu0 %v203_v3  ;;  %219 = vmatprep.subr.bf16.mxu1 %v203_v3  ;;  %v24_v11 = vld [vmem:[%s327_s1 + $0x30] sm:$0xff]  ;;  %v15_v14 = vld [vmem:[%s328_s0 + $0x8] sm:$0xff]  ;;  %v17_v15 = vld [vmem:[%s328_s0 + $0x18] sm:$0xff] }
   0x5   :  { %206 = vmatpush3.bf16.msra.mxu0 %v203_v3  ;;  %223 = vmatpush3.bf16.msra.mxu1 %v203_v3  ;;  %v215_v13 = vpack.c.bf16 %v25_v12, %v24_v11  ;;  %v27_v16 = vld [vmem:[%s329_s2 + $0x8] sm:$0xff]  ;;  %v29_v17 = vld [vmem:[%s329_s2 + $0x18] sm:$0xff]  ;;  %v26_v18 = vld [vmem:[%s329_s2] sm:$0xff] }
   0x6   :  { %208 = vmatprep.subr.bf16.mxu0 %v207_v5  ;;  %220 = vmatprep.subr.bf16.mxu1 %v207_v5  ;;  %v28_v19 = vld [vmem:[%s329_s2 + $0x10] sm:$0xff] }
   0x7   :  { %197 = vmatprep.mubr.msk.f32.mxu0 %vm30_vm0, %v14_v8  ;;  %200 = vmatprep.mubr.msk.f32.mxu1 %vm30_vm0, %v16_v9 }
   0x9   :  { %210 = vmatpush3.bf16.msra.mxu0 %v207_v5  ;;  %224 = vmatpush3.bf16.msra.mxu1 %v207_v5 }
   0xa   :  { %212 = vmatprep.subr.bf16.mxu0 %v211_v10  ;;  %221 = vmatprep.subr.bf16.mxu1 %v211_v10 }
   0xd   :  { %214 = vmatpush3.bf16.msra.mxu0 %v211_v10  ;;  %225 = vmatpush3.bf16.msra.mxu1 %v211_v10 }
   0xe   :  { %216 = vmatprep.subr.bf16.mxu0 %v215_v13  ;;  %222 = vmatprep.subr.bf16.mxu1 %v215_v13 }
  0x11   :  { %218 = vmatpush3.bf16.msra.mxu0 %v215_v13  ;;  %226 = vmatpush3.bf16.msra.mxu1 %v215_v13 }
  0x14   :  { %198 = vmatmul.mubr.msk.f32.vlgmr.msra.gmra.mrb[0].mxu0 %vm30_vm0, %v15_v14  ;;  %201 = vmatmul.mubr.msk.f32.vlgmr.msra.gmra.mrb[0].mxu1 %vm30_vm0, %v17_v15 }
  0xe7   :  { %v199_v20 = vpop.f32.mrb[0].mxu0  ;;  %v202_v21 = vpop.f32.mrb[0].mxu1 }
  0xe8   :  { %v115_v22 = vadd.f32 %v199_v20, %v27_v16  ;;  %v125_v23 = vadd.f32 %v202_v21, %v29_v17  ;;  %v109_v24 = vpop.f32.mrb[1].mxu0  ;;  %v119_v25 = vpop.f32.mrb[1].mxu1 }
  0xe9   :  { %v110_v26 = vadd.f32 %v109_v24, %v26_v18  ;;  %v120_v27 = vadd.f32 %v119_v25, %v28_v19 }
  0xea   :  { %v166_v28 = vmul.f32 -1.442695, %v115_v22  ;;  %v168_v29 = vmul.f32 -1.442695, %v125_v23 }
  0xeb   :  { %v165_v30 = vmul.f32 -1.442695, %v110_v26  ;;  %v167_v31 = vmul.f32 -1.442695, %v120_v27 }
  0xec   :  { %227 = vpow2.f32 %v166_v28 }
  0xed   :  { %229 = vpow2.f32 %v168_v29 }
  0xee   :  { %231 = vpow2.f32 %v165_v30 }
  0xef   :  { %233 = vpow2.f32 %v167_v31 }
  0xf6   :  { %v228_v32 = vpop.eup %227 }
  0xf7   :  { %v230_v33 = vpop.eup %229  ;;  %v141_v34 = vadd.f32 1.0, %v228_v32 }
  0xf8   :  { %v232_v35 = vpop.eup %231  ;;  %v143_v36 = vadd.f32 1.0, %v230_v33 }
  0xf9   :  { %v234_v37 = vpop.eup %233  ;;  %235 = vrcp.f32 %v141_v34  ;;  %v140_v38 = vadd.f32 1.0, %v232_v35 }
  0xfa   :  { %237 = vrcp.f32 %v143_v36  ;;  %v142_v39 = vadd.f32 1.0, %v234_v37 }
  0xfb   :  { %239 = vrcp.f32 %v140_v38 }
  0xfc   :  { %241 = vrcp.f32 %v142_v39 }
 0x103   :  { %v236_v40 = vpop.eup %235 }
 0x104   :  { %v238_v41 = vpop.eup %237  ;;  %154 = vst.msk [vmem:[%s330_s3 + $0x8] sm:$0xff] %vm152_vm1, %v236_v40 }
 0x105   :  { %v240_v42 = vpop.eup %239  ;;  %156 = vst.msk [vmem:[%s330_s3 + $0x18] sm:$0xff] %vm152_vm1, %v238_v41 }
 0x106   :  { %v242_v43 = vpop.eup %241  ;;  %153 = vst.msk [vmem:[%s330_s3] sm:$0xff] %vm152_vm1, %v240_v42 }
 0x107   :  { %155 = vst.msk [vmem:[%s330_s3 + $0x10] sm:$0xff] %vm152_vm1, %v242_v43 }

</bundles_post_ra>
